<compile_context>
chip_gen: v7x
topology: tpu7x:2x2x1
jax: 0.10.0
libtpu: 0.0.40
codegen_flags: <defaults>
</compile_context>

<pallas_src>
import jax
import jax.numpy as jnp
from jax.experimental import pallas as pl
from jax.experimental.pallas import tpu as pltpu

_BIG = 1e30


def _round_up(v: int, m: int) -> int:
    return ((v + m - 1) // m) * m


def _triplet_mine_kernel(margin_ref, x_ref, xt_ref, sqr_ref, sqc_ref,
                         tr_ref, tc_ref, vc_ref,
                         hinge_ref, prec_ref,
                         acc_max, acc_min):
    j = pl.program_id(1)

    @pl.when(j == 0)
    def _():
        acc_max[...] = jnp.full_like(acc_max, -_BIG)
        acc_min[...] = jnp.full_like(acc_min, _BIG)

    # Gram tile on the MXU: (TM, Dp) @ (Dp, TN) -> (TM, TN) f32.
    gram = jnp.dot(x_ref[...], xt_ref[...], preferred_element_type=jnp.float32)

    # Partial squared distance: ||x_j||^2 - 2 <x_i, x_j>.
    # (The row-constant ||x_i||^2 is added at finalize; it does not affect
    #  per-row arg-max / arg-min.)
    s = sqc_ref[...] - 2.0 * gram                                  # (TM, TN)

    # Same-class (and valid) candidates are positives; everything else is a
    # negative candidate. Padded columns carry sq_j = +BIG so they never win
    # the negative min, and the valid mask keeps them out of the positive max.
    mask_pos = (tr_ref[...] == tc_ref[...]) & (vc_ref[...] != 0)   # (TM, TN)

    pos = jnp.where(mask_pos, s, -_BIG)
    neg = jnp.where(mask_pos, _BIG, s)

    acc_max[...] = jnp.maximum(acc_max[...], jnp.max(pos, axis=1, keepdims=True))
    acc_min[...] = jnp.minimum(acc_min[...], jnp.min(neg, axis=1, keepdims=True))

    @pl.when(j == pl.num_programs(1) - 1)
    def _():
        sq_i = sqr_ref[...]                                        # (TM, 1)
        dist_ap = jnp.sqrt(jnp.maximum(sq_i + acc_max[...], 1e-12))
        dist_an = jnp.sqrt(jnp.maximum(sq_i + acc_min[...], 1e-12))
        margin = margin_ref[0, 0]
        # MarginRankingLoss(dist_an, dist_ap, y=1) elementwise term.
        hinge_ref[...] = jnp.maximum(dist_ap - dist_an + margin, 0.0)
        prec_ref[...] = (dist_an > dist_ap).astype(jnp.float32)


def triplet_loss(inputs: jax.Array, targets: jax.Array, margin=0.0,
                 *, use_bf16_gram: bool = False):
    """inputs: (n, d) float features; targets: (n,) int labels.

    Returns (loss, prec) matching the PyTorch TripletLoss forward.
    """
    n, d = inputs.shape
    x = inputs.astype(jnp.float32)
    t = targets.astype(jnp.int32)

    # Lane/sublane alignment + tile selection.
    d_pad = _round_up(d, 128)
    tile = 256
    if n <= tile:
        n_pad = _round_up(n, 8)
        tm = tn = n_pad
    else:
        tm = tn = tile
        n_pad = _round_up(n, tile)

    # Padded feature matrix (zeros in padded rows / lanes: norms & dots unchanged).
    x_p = jnp.zeros((n_pad, d_pad), jnp.float32).at[:n, :d].set(x)

    sq = jnp.sum(x_p * x_p, axis=1)                         # (n_pad,)
    valid = jnp.arange(n_pad) < n
    sq_row = sq[:, None]                                    # (n_pad, 1)
    sq_col = jnp.where(valid, sq, _BIG)[None, :]            # (1, n_pad), pads -> +BIG

    t_p = jnp.zeros((n_pad,), jnp.int32).at[:n].set(t)
    t_row = t_p[:, None]                                    # (n_pad, 1)
    t_col = t_p[None, :]                                    # (1, n_pad)
    valid_col = valid.astype(jnp.int32)[None, :]            # (1, n_pad)

    gram_dtype = jnp.bfloat16 if use_bf16_gram else jnp.float32
    x_lhs = x_p.astype(gram_dtype)                          # (n_pad, d_pad)
    x_rhs = x_p.T.astype(gram_dtype)                        # (d_pad, n_pad) - no in-kernel transpose

    margin_arr = jnp.asarray(margin, jnp.float32).reshape(1, 1)

    grid = (n_pad // tm, n_pad // tn)
    hinge, prec_ind = pl.pallas_call(
        _triplet_mine_kernel,
        out_shape=(
            jax.ShapeDtypeStruct((n_pad, 1), jnp.float32),
            jax.ShapeDtypeStruct((n_pad, 1), jnp.float32),
        ),
        grid_spec=pltpu.PrefetchScalarGridSpec(
            num_scalar_prefetch=0,
            grid=grid,
            in_specs=[
                pl.BlockSpec(memory_space=pltpu.MemorySpace.SMEM),   # margin
                pl.BlockSpec((tm, d_pad), lambda i, j: (i, 0)),      # anchor rows
                pl.BlockSpec((d_pad, tn), lambda i, j: (0, j)),      # candidate cols (x.T)
                pl.BlockSpec((tm, 1), lambda i, j: (i, 0)),          # ||x_i||^2
                pl.BlockSpec((1, tn), lambda i, j: (0, j)),          # ||x_j||^2 (+BIG on pads)
                pl.BlockSpec((tm, 1), lambda i, j: (i, 0)),          # labels (rows)
                pl.BlockSpec((1, tn), lambda i, j: (0, j)),          # labels (cols)
                pl.BlockSpec((1, tn), lambda i, j: (0, j)),          # valid-col mask
            ],
            out_specs=(
                pl.BlockSpec((tm, 1), lambda i, j: (i, 0)),
                pl.BlockSpec((tm, 1), lambda i, j: (i, 0)),
            ),
            scratch_shapes=[
                pltpu.VMEM((tm, 1), jnp.float32),                    # running max (pos)
                pltpu.VMEM((tm, 1), jnp.float32),                    # running min (neg)
            ],
        ),
        compiler_params=pltpu.CompilerParams(
            dimension_semantics=("parallel", "arbitrary"),
            vmem_limit_bytes=48 * 1024 * 1024,
        ),
    )(margin_arr, x_lhs, x_rhs, sq_row, sq_col, t_row, t_col, valid_col)

    inv_n = jnp.float32(1.0 / n)
    loss = jnp.sum(hinge[:n, 0]) * inv_n
    prec = jnp.sum(prec_ind[:n, 0]) * inv_n
    return loss, prec


def _reference(inputs, targets, margin=0.0):
    # Pure-JAX reference mirroring the PyTorch forward.
    n = inputs.shape[0]
    sq = jnp.sum(inputs ** 2, axis=1, keepdims=True)
    dist2 = sq + sq.T - 2.0 * inputs @ inputs.T
    dist = jnp.sqrt(jnp.maximum(dist2, 1e-12))
    mask = targets[:, None] == targets[None, :]
    dist_ap = jnp.max(jnp.where(mask, dist, -jnp.inf), axis=1)
    dist_an = jnp.min(jnp.where(mask, jnp.inf, dist), axis=1)
    loss = jnp.mean(jnp.maximum(dist_ap - dist_an + margin, 0.0))
    prec = jnp.sum(dist_an > dist_ap) / n
    return loss, prec


if __name__ == "__main__":
    key = jax.random.PRNGKey(0)
    k1, k2 = jax.random.split(key)

    # Case 1: aligned small shapes.
    n1, d1 = 8, 32
    x1 = jax.random.normal(k1, (n1, d1), dtype=jnp.float32)
    t1 = jnp.array([0, 0, 1, 1, 2, 2, 3, 3], dtype=jnp.int32)
    loss1, prec1 = triplet_loss(x1, t1, margin=0.0)
    jax.block_until_ready((loss1, prec1))
    rl1, rp1 = _reference(x1, t1, margin=0.0)
    assert jnp.allclose(loss1, rl1, atol=1e-5, rtol=1e-5), (loss1, rl1)
    assert jnp.allclose(prec1, rp1, atol=1e-6), (prec1, rp1)

    # Case 2: unaligned n/d (exercises the padding + masking path) and margin > 0.
    n2, d2 = 10, 40
    x2 = jax.random.normal(k2, (n2, d2), dtype=jnp.float32)
    t2 = jnp.array([0, 0, 0, 1, 1, 2, 2, 2, 3, 3], dtype=jnp.int32)
    loss2, prec2 = triplet_loss(x2, t2, margin=0.3)
    jax.block_until_ready((loss2, prec2))
    rl2, rp2 = _reference(x2, t2, margin=0.3)
    assert jnp.allclose(loss2, rl2, atol=1e-5, rtol=1e-5), (loss2, rl2)
    assert jnp.allclose(prec2, rp2, atol=1e-6), (prec2, rp2)

    print("KERNEL_OK")
</pallas_src>

<mosaic_0001>
module attributes {stable_mosaic.version = 11 : i64} {
  func.func @_triplet_mine_kernel(%arg0: i32, %arg1: i32, %arg2: memref<1x1xf32, #tpu.memory_space<smem>>, %arg3: memref<8x128xf32, #tpu.memory_space<vmem>>, %arg4: memref<128x8xf32, #tpu.memory_space<vmem>>, %arg5: memref<8x1xf32, #tpu.memory_space<vmem>>, %arg6: memref<1x8xf32, #tpu.memory_space<vmem>>, %arg7: memref<8x1xi32, #tpu.memory_space<vmem>>, %arg8: memref<1x8xi32, #tpu.memory_space<vmem>>, %arg9: memref<1x8xi32, #tpu.memory_space<vmem>>, %arg10: memref<8x1xf32, #tpu.memory_space<vmem>>, %arg11: memref<8x1xf32, #tpu.memory_space<vmem>>, %arg12: memref<8x1xf32, #tpu.memory_space<vmem>>, %arg13: memref<8x1xf32, #tpu.memory_space<vmem>>) attributes {dimension_semantics = [#tpu.dimension_semantics<parallel>, #tpu.dimension_semantics<arbitrary>], iteration_bounds = array<i64: 1, 1>, scalar_prefetch = 0 : i64, scratch_operands = 2 : i64, tpu.core_type = #tpu.core_type<tc>, window_params = [{transform_indices = @transform_0, window_bounds = array<i64: 1, 1>}, {transform_indices = @transform_1, window_bounds = array<i64: 8, 128>}, {transform_indices = @transform_2, window_bounds = array<i64: 128, 8>}, {transform_indices = @transform_3, window_bounds = array<i64: 8, 1>}, {transform_indices = @transform_4, window_bounds = array<i64: 1, 8>}, {transform_indices = @transform_5, window_bounds = array<i64: 8, 1>}, {transform_indices = @transform_6, window_bounds = array<i64: 1, 8>}, {transform_indices = @transform_7, window_bounds = array<i64: 1, 8>}, {transform_indices = @transform_8, window_bounds = array<i64: 8, 1>}, {transform_indices = @transform_9, window_bounds = array<i64: 8, 1>}]} {
    %c0_i32 = arith.constant 0 : i32
    %0 = arith.cmpi eq, %arg1, %c0_i32 : i32
    %1 = arith.extui %0 : i1 to i32
    %c0_i32_0 = arith.constant 0 : i32
    %2 = arith.cmpi ne, %1, %c0_i32_0 : i32
    scf.if %2 {
      %cst_28 = arith.constant -1.000000e+30 : f32
      %38 = vector.broadcast %cst_28 : f32 to vector<8x1xf32>
      %c0_29 = arith.constant 0 : index
      %c0_30 = arith.constant 0 : index
      %39 = vector.load %arg12[%c0_29, %c0_30] : memref<8x1xf32, #tpu.memory_space<vmem>>, vector<8x1xf32>
      tpu.vector_store %arg12[%c0_29, %c0_30], %38 {strides = array<i32>} : memref<8x1xf32, #tpu.memory_space<vmem>>, vector<8x1xf32>,
      %cst_31 = arith.constant 1.000000e+30 : f32
      %40 = vector.broadcast %cst_31 : f32 to vector<8x1xf32>
      %c0_32 = arith.constant 0 : index
      %c0_33 = arith.constant 0 : index
      %41 = vector.load %arg13[%c0_32, %c0_33] : memref<8x1xf32, #tpu.memory_space<vmem>>, vector<8x1xf32>
      tpu.vector_store %arg13[%c0_32, %c0_33], %40 {strides = array<i32>} : memref<8x1xf32, #tpu.memory_space<vmem>>, vector<8x1xf32>,
    } else {
    }
    %c0 = arith.constant 0 : index
    %c0_1 = arith.constant 0 : index
    %3 = vector.load %arg3[%c0, %c0_1] : memref<8x128xf32, #tpu.memory_space<vmem>>, vector<8x128xf32>
    %c0_2 = arith.constant 0 : index
    %c0_3 = arith.constant 0 : index
    %4 = vector.load %arg4[%c0_2, %c0_3] : memref<128x8xf32, #tpu.memory_space<vmem>>, vector<128x8xf32>
    %cst = arith.constant dense<0.000000e+00> : vector<8x8xf32>
    %5 = tpu.matmul %3, %4, %cst {dimension_numbers = #tpu.dot_dimension_numbers<[1], [0], [0], [1], [0, 0, 1, 1], [], []>} : vector<8x128xf32>, vector<128x8xf32>, vector<8x8xf32> -> vector<8x8xf32>
    %c0_4 = arith.constant 0 : index
    %c0_5 = arith.constant 0 : index
    %6 = vector.load %arg6[%c0_4, %c0_5] : memref<1x8xf32, #tpu.memory_space<vmem>>, vector<1x8xf32>
    %cst_6 = arith.constant 2.000000e+00 : f32
    %7 = vector.broadcast %cst_6 : f32 to vector<8x8xf32>
    %8 = arith.mulf %7, %5 : vector<8x8xf32>
    %9 = vector.broadcast %6 : vector<1x8xf32> to vector<8x8xf32>
    %10 = arith.subf %9, %8 : vector<8x8xf32>
    %c0_7 = arith.constant 0 : index
    %c0_8 = arith.constant 0 : index
    %11 = vector.load %arg7[%c0_7, %c0_8] : memref<8x1xi32, #tpu.memory_space<vmem>>, vector<8x1xi32>
    %c0_9 = arith.constant 0 : index
    %c0_10 = arith.constant 0 : index
    %12 = vector.load %arg8[%c0_9, %c0_10] : memref<1x8xi32, #tpu.memory_space<vmem>>, vector<1x8xi32>
    %13 = vector.broadcast %11 : vector<8x1xi32> to vector<8x8xi32>
    %14 = vector.broadcast %12 : vector<1x8xi32> to vector<8x8xi32>
    %15 = arith.cmpi eq, %13, %14 : vector<8x8xi32>
    %c0_11 = arith.constant 0 : index
    %c0_12 = arith.constant 0 : index
    %16 = vector.load %arg9[%c0_11, %c0_12] : memref<1x8xi32, #tpu.memory_space<vmem>>, vector<1x8xi32>
    %c0_i32_13 = arith.constant 0 : i32
    %17 = vector.broadcast %c0_i32_13 : i32 to vector<1x8xi32>
    %18 = arith.cmpi ne, %16, %17 : vector<1x8xi32>
    %19 = vector.broadcast %18 : vector<1x8xi1> to vector<8x8xi1>
    %20 = arith.andi %15, %19 : vector<8x8xi1>
    %cst_14 = arith.constant -1.000000e+30 : f32
    %21 = vector.broadcast %cst_14 : f32 to vector<8x8xf32>
    %22 = arith.select %20, %10, %21 : vector<8x8xi1>, vector<8x8xf32>
    %cst_15 = arith.constant 1.000000e+30 : f32
    %23 = vector.broadcast %cst_15 : f32 to vector<8x8xf32>
    %24 = arith.select %20, %23, %10 : vector<8x8xi1>, vector<8x8xf32>
    %c0_16 = arith.constant 0 : index
    %c0_17 = arith.constant 0 : index
    %25 = vector.load %arg12[%c0_16, %c0_17] : memref<8x1xf32, #tpu.memory_space<vmem>>, vector<8x1xf32>
    %cst_18 = arith.constant dense<0xFF800000> : vector<8xf32>
    %26 = vector.multi_reduction <maximumf>, %22, %cst_18 [1] : vector<8x8xf32> to vector<8xf32>
    %27 = vector.shape_cast %26 : vector<8xf32> to vector<8x1xf32>
    %28 = arith.maximumf %25, %27 : vector<8x1xf32>
    %c0_19 = arith.constant 0 : index
    %c0_20 = arith.constant 0 : index
    %29 = vector.load %arg12[%c0_19, %c0_20] : memref<8x1xf32, #tpu.memory_space<vmem>>, vector<8x1xf32>
    tpu.vector_store %arg12[%c0_19, %c0_20], %28 {strides = array<i32>} : memref<8x1xf32, #tpu.memory_space<vmem>>, vector<8x1xf32>,
    %c0_21 = arith.constant 0 : index
    %c0_22 = arith.constant 0 : index
    %30 = vector.load %arg13[%c0_21, %c0_22] : memref<8x1xf32, #tpu.memory_space<vmem>>, vector<8x1xf32>
    %cst_23 = arith.constant dense<0x7F800000> : vector<8xf32>
    %31 = vector.multi_reduction <minimumf>, %24, %cst_23 [1] : vector<8x8xf32> to vector<8xf32>
    %32 = vector.shape_cast %31 : vector<8xf32> to vector<8x1xf32>
    %33 = arith.minimumf %30, %32 : vector<8x1xf32>
    %c0_24 = arith.constant 0 : index
    %c0_25 = arith.constant 0 : index
    %34 = vector.load %arg13[%c0_24, %c0_25] : memref<8x1xf32, #tpu.memory_space<vmem>>, vector<8x1xf32>
    tpu.vector_store %arg13[%c0_24, %c0_25], %33 {strides = array<i32>} : memref<8x1xf32, #tpu.memory_space<vmem>>, vector<8x1xf32>,
    %c0_i32_26 = arith.constant 0 : i32
    %35 = arith.cmpi eq, %arg1, %c0_i32_26 : i32
    %36 = arith.extui %35 : i1 to i32
    %c0_i32_27 = arith.constant 0 : i32
    %37 = arith.cmpi ne, %36, %c0_i32_27 : i32
    scf.if %37 {
      %c0_28 = arith.constant 0 : index
      %c0_29 = arith.constant 0 : index
      %38 = vector.load %arg5[%c0_28, %c0_29] : memref<8x1xf32, #tpu.memory_space<vmem>>, vector<8x1xf32>
      %c0_30 = arith.constant 0 : index
      %c0_31 = arith.constant 0 : index
      %39 = vector.load %arg12[%c0_30, %c0_31] : memref<8x1xf32, #tpu.memory_space<vmem>>, vector<8x1xf32>
      %40 = arith.addf %38, %39 : vector<8x1xf32>
      %cst_32 = arith.constant 9.99999996E-13 : f32
      %41 = vector.broadcast %cst_32 : f32 to vector<8x1xf32>
      %42 = arith.maximumf %40, %41 : vector<8x1xf32>
      %43 = math.sqrt %42 : vector<8x1xf32>
      %c0_33 = arith.constant 0 : index
      %c0_34 = arith.constant 0 : index
      %44 = vector.load %arg13[%c0_33, %c0_34] : memref<8x1xf32, #tpu.memory_space<vmem>>, vector<8x1xf32>
      %45 = arith.addf %38, %44 : vector<8x1xf32>
      %cst_35 = arith.constant 9.99999996E-13 : f32
      %46 = vector.broadcast %cst_35 : f32 to vector<8x1xf32>
      %47 = arith.maximumf %45, %46 : vector<8x1xf32>
      %48 = math.sqrt %47 : vector<8x1xf32>
      %c0_36 = arith.constant 0 : index
      %c0_37 = arith.constant 0 : index
      %49 = memref.load %arg2[%c0_36, %c0_37] : memref<1x1xf32, #tpu.memory_space<smem>>
      %50 = arith.subf %43, %48 : vector<8x1xf32>
      %51 = vector.broadcast %49 : f32 to vector<8x1xf32>
      %52 = arith.addf %50, %51 : vector<8x1xf32>
      %cst_38 = arith.constant 0.000000e+00 : f32
      %53 = vector.broadcast %cst_38 : f32 to vector<8x1xf32>
      %54 = arith.maximumf %52, %53 : vector<8x1xf32>
      %c0_39 = arith.constant 0 : index
      %c0_40 = arith.constant 0 : index
      %55 = vector.load %arg10[%c0_39, %c0_40] : memref<8x1xf32, #tpu.memory_space<vmem>>, vector<8x1xf32>
      tpu.vector_store %arg10[%c0_39, %c0_40], %54 {strides = array<i32>} : memref<8x1xf32, #tpu.memory_space<vmem>>, vector<8x1xf32>,
      %56 = arith.cmpf ogt, %48, %43 : vector<8x1xf32>
      %57 = arith.extui %56 : vector<8x1xi1> to vector<8x1xi32>
      %58 = arith.sitofp %57 : vector<8x1xi32> to vector<8x1xf32>
      %c0_41 = arith.constant 0 : index
      %c0_42 = arith.constant 0 : index
      %59 = vector.load %arg11[%c0_41, %c0_42] : memref<8x1xf32, #tpu.memory_space<vmem>>, vector<8x1xf32>
      tpu.vector_store %arg11[%c0_41, %c0_42], %58 {strides = array<i32>} : memref<8x1xf32, #tpu.memory_space<vmem>>, vector<8x1xf32>,
    } else {
    }
    return
  }
  func.func @transform_0(%arg0: i32, %arg1: i32) -> (i32, i32) {
    %c0_i32 = arith.constant 0 : i32
    %c0_i32_0 = arith.constant 0 : i32
    %c0_i32_1 = arith.constant 0 : i32
    return %c0_i32, %c0_i32_0 : i32, i32
  }
  func.func @transform_1(%arg0: i32, %arg1: i32) -> (i32, i32) {
    %c0_i32 = arith.constant 0 : i32
    %c0_i32_0 = arith.constant 0 : i32
    return %arg0, %c0_i32 : i32, i32
  }
  func.func @transform_2(%arg0: i32, %arg1: i32) -> (i32, i32) {
    %c0_i32 = arith.constant 0 : i32
    %c0_i32_0 = arith.constant 0 : i32
    return %c0_i32, %arg1 : i32, i32
  }
  func.func @transform_3(%arg0: i32, %arg1: i32) -> (i32, i32) {
    %c0_i32 = arith.constant 0 : i32
    %c0_i32_0 = arith.constant 0 : i32
    return %arg0, %c0_i32 : i32, i32
  }
  func.func @transform_4(%arg0: i32, %arg1: i32) -> (i32, i32) {
    %c0_i32 = arith.constant 0 : i32
    %c0_i32_0 = arith.constant 0 : i32
    return %c0_i32, %arg1 : i32, i32
  }
  func.func @transform_5(%arg0: i32, %arg1: i32) -> (i32, i32) {
    %c0_i32 = arith.constant 0 : i32
    %c0_i32_0 = arith.constant 0 : i32
    return %arg0, %c0_i32 : i32, i32
  }
  func.func @transform_6(%arg0: i32, %arg1: i32) -> (i32, i32) {
    %c0_i32 = arith.constant 0 : i32
    %c0_i32_0 = arith.constant 0 : i32
    return %c0_i32, %arg1 : i32, i32
  }
  func.func @transform_7(%arg0: i32, %arg1: i32) -> (i32, i32) {
    %c0_i32 = arith.constant 0 : i32
    %c0_i32_0 = arith.constant 0 : i32
    return %c0_i32, %arg1 : i32, i32
  }
  func.func @transform_8(%arg0: i32, %arg1: i32) -> (i32, i32) {
    %c0_i32 = arith.constant 0 : i32
    %c0_i32_0 = arith.constant 0 : i32
    return %arg0, %c0_i32 : i32, i32
  }
  func.func @transform_9(%arg0: i32, %arg1: i32) -> (i32, i32) {
    %c0_i32 = arith.constant 0 : i32
    %c0_i32_0 = arith.constant 0 : i32
    return %arg0, %c0_i32 : i32, i32
  }
}

</mosaic_0001>

<bundles_post_ra>
// kernel: tpu_custom_call.1
= control target key start
LH: loop header
LB: loop body
LE: loop exit
PB: predicated region body
PF: predicated region fallthrough
CT: control target
= control target key end

     0   :  { %v302_v0 = vmov 0.0|0.0   ;;  %vm303_vm0 = vmmov 0   ;;  %v304_v4 = vmov 0.0   ;;  %v305_v7 = vmov 0   ;;  %s441_s2 = inlined_call_operand.vmem [shape: f32[128,8], index: 2, kind: input, shape index: {}]   ;;  %s442_s5 = inlined_call_operand.vmem [shape: s32[8,1], index: 5, kind: input, shape index: {}]   ;;  %s443_s1 = inlined_call_operand.vmem [shape: f32[8,128], index: 1, kind: input, shape index: {}]   ;;  %s444_s7 = inlined_call_operand.vmem [shape: s32[1,8], index: 7, kind: input, shape index: {}]   ;;  %s445_s6 = inlined_call_operand.vmem [shape: s32[1,8], index: 6, kind: input, shape index: {}]   ;;  %s446_s4 = inlined_call_operand.vmem [shape: f32[1,8], index: 4, kind: input, shape index: {}]   ;;  %s447_s3 = inlined_call_operand.vmem [shape: f32[8,1], index: 3, kind: input, shape index: {}]   ;;  %s448_s0 = inlined_call_operand.<no memory space> [shape: f32[1,1], index: 0, kind: input, shape index: {}]   ;;  %s449_s9 = inlined_call_operand.vmem [shape: f32[8,1], index: 9, kind: output, shape index: {1}]   ;;  %s450_s8 = inlined_call_operand.vmem [shape: f32[8,1], index: 8, kind: output, shape index: {0}]  }
   0x1   :  { %267 = vmatprep.subr.bf16.mxu0 %v302_v0  ;;  %v40_v1 = vld [vmem:[%s441_s2] sm:$0xff]  ;;  %v41_v2 = vld [vmem:[%s441_s2 + $0x8] sm:$0xff]  ;;  %v42_v3 = vld [vmem:[%s441_s2 + $0x10] sm:$0xff]  ;;  %264 = vmatprep.mubr.msk.f32.mxu0 %vm303_vm0, %v304_v4  ;;  %vm36_vm1 = vcmask 7168   ;;  %v306_v29 = vmov 1e+30   ;;  %v148_v30 = vlaneseq }
   0x2   :  { %v268_v5 = vpack.c.bf16 %v41_v2, %v40_v1  ;;  %v43_v6 = vld [vmem:[%s441_s2 + $0x18] sm:$0xff]  ;;  %297 = vset.pattern.permute.xlu0 %v305_v7  ;;  %v44_v9 = vld [vmem:[%s441_s2 + $0x20] sm:$0xff]  ;;  %v45_v10 = vld [vmem:[%s441_s2 + $0x28] sm:$0xff]  ;;  %38 = vst.msk [vmem:[#allocation3] sm:$0xff] %vm36_vm1, %v306_v29  ;;  %vm157_vm6 = vcmask 64512  }
   0x3   :  { %v271_v8 = vpack.c.bf16 %v43_v6, %v42_v3  ;;  %v135_v11 = vld [vmem:[%s442_s5] sm:$0xff]  ;;  %v274_v12 = vpack.c.bf16 %v45_v10, %v44_v9  ;;  %v46_v13 = vld [vmem:[%s441_s2 + $0x30] sm:$0xff]  ;;  %v47_v14 = vld [vmem:[%s441_s2 + $0x38] sm:$0xff]  ;;  %v149_v32 = vshrl.u32 %v148_v30, 7  ;;  %v307_v47 = vmov -1e+30  }
   0x4   :  { %269 = vmatpush3.bf16.msra.mxu0 %v268_v5  ;;  %138 = vperm.xlu0 %297, %v135_v11   ;;  %v277_v15 = vpack.c.bf16 %v47_v14, %v46_v13  ;;  %v48_v16 = vld [vmem:[%s441_s2 + $0x40] sm:$0xff]  ;;  %v49_v17 = vld [vmem:[%s441_s2 + $0x48] sm:$0xff]  ;;  %v50_v19 = vld [vmem:[%s441_s2 + $0x50] sm:$0xff]  ;;  %37 = vst.msk [vmem:[#allocation2] sm:$0xff] %vm36_vm1, %v307_v47 }
   0x5   :  { %270 = vmatprep.subr.bf16.mxu0 %v302_v0  ;;  %v280_v18 = vpack.c.bf16 %v49_v17, %v48_v16  ;;  %v51_v20 = vld [vmem:[%s441_s2 + $0x58] sm:$0xff]  ;;  %v52_v22 = vld [vmem:[%s441_s2 + $0x60] sm:$0xff]  ;;  %v53_v23 = vld [vmem:[%s441_s2 + $0x68] sm:$0xff]  ;;  %v150_v33 = vsub.s32 0, %v149_v32 }
   0x6   :  { %v283_v21 = vpack.c.bf16 %v51_v20, %v50_v19  ;;  %v286_v24 = vpack.c.bf16 %v53_v23, %v52_v22  ;;  %v54_v25 = vld [vmem:[%s441_s2 + $0x70] sm:$0xff]  ;;  %v55_v26 = vld [vmem:[%s441_s2 + $0x78] sm:$0xff]  ;;  %v39_v28 = vld [vmem:[%s443_s1] sm:$0xff] }
   0x7   :  { %v289_v27 = vpack.c.bf16 %v55_v26, %v54_v25  ;;  %v145_v31 = vld [vmem:[%s444_s7] sm:$0x1] }
   0x8   :  { %272 = vmatpush3.bf16.msra.mxu0 %v271_v8  ;;  %vm146_vm2 = vcmp.ne.s32.totalorder %v145_v31, 0  ;;  %v213_v36 = vld [vmem:[%s445_s6] ss:$0 sm:$0xff]  ;;  %v196_v8 = vstv %s448_s0 }
   0x9   :  { %273 = vmatprep.subr.bf16.mxu0 %v302_v0  ;;  %v147_v34 = vsel %vm146_vm2, 1, %v305_v7  ;;  %v212_v39 = vld [vmem:[%s446_s4] ss:$0 sm:$0xff]  ;;  %v164_v48 = vld [vmem:[#allocation3] sm:$0xff] }
   0xa   :  { %v151_v35 = vrot.slane %v147_v34, %v150_v33  ;;  %v173_v54 = vld [vmem:[%s447_s3] sm:$0xff] }
   0xb   :  { %v156_v49 = vld [vmem:[#allocation2] sm:$0xff] }
   0xc   :  { %275 = vmatpush3.bf16.msra.mxu0 %v274_v12  ;;  %vm152_vm3 = vcmp.eq.s32.totalorder %v151_v35, 1 }
   0xd   :  { %276 = vmatprep.subr.bf16.mxu0 %v302_v0 }
  0x10   :  { %278 = vmatpush3.bf16.msra.mxu0 %v277_v15 }
  0x11   :  { %279 = vmatprep.subr.bf16.mxu0 %v302_v0 }
  0x14   :  { %281 = vmatpush3.bf16.msra.mxu0 %v280_v18 }
  0x15   :  { %282 = vmatprep.subr.bf16.mxu0 %v302_v0 }
  0x18   :  { %284 = vmatpush3.bf16.msra.mxu0 %v283_v21 }
  0x19   :  { %285 = vmatprep.subr.bf16.mxu0 %v302_v0 }
  0x1c   :  { %287 = vmatpush3.bf16.msra.mxu0 %v286_v24 }
  0x1d   :  { %288 = vmatprep.subr.bf16.mxu0 %v302_v0 }
  0x20   :  { %290 = vmatpush3.bf16.msra.mxu0 %v289_v27 }
  0x23   :  { %265 = vmatmul.mubr.f32.vlgmr.msra.gmra.mrb[0].mxu0 %v39_v28 }
  0x83   :  { %v139_v37 = vpop.permute.xlu0 %138 }
  0x84   :  { %vm144_vm4 = vcmp.eq.s32.totalorder %v139_v37, %v213_v36 }
  0x85   :  { %vm153_vm5 = vmand %vm144_vm4, %vm152_vm3 }
  0xf6   :  { %v122_v38 = vpop.f32.mrb[0].mxu0 }
  0xf7   :  { %v127_v40 = vmul.f32 2.0, %v122_v38  ;;  %v266_v41 = vpop.f32.mrb[1].mxu0 }
  0xf9   :  { %v134_v42 = vsub.f32 %v212_v39, %v127_v40 }
  0xfb   :  { %v155_v43 = vsel %vm153_vm5, 1e+30, %v134_v42  ;;  %v154_v44 = vsel %vm153_vm5, %v134_v42, -1e+30 }
  0xfc   :  { %v165_v45 = vsel %vm157_vm6, %v155_v43, inf  ;;  %v158_v46 = vsel %vm157_vm6, %v154_v44, -inf }
  0xfd   :  { %166 = vmin.xlane.f32.xlu1 %v165_v45  ;;  %159 = vmax.xlane.f32.xlu0 %v158_v46 }
 0x18a   :  { %v167_v50 = vpop.xlane.xlu1 %166  ;;  %v160_v51 = vpop.xlane.xlu0 %159 }
 0x18b   :  { %v168_v52 = vmin.f32 %v164_v48, %v167_v50  ;;  %v161_v53 = vmax.f32 %v156_v49, %v160_v51 }
 0x18d   :  { %169 = vst.msk [vmem:[#allocation3] sm:$0xff] %vm36_vm1, %v168_v52  ;;  %163 = vst.msk [vmem:[#allocation2] sm:$0xff] %vm36_vm1, %v161_v53 }
 0x194   :  { %v184_v55 = vld [vmem:[#allocation3] sm:$0xff]  ;;  %v174_v56 = vld [vmem:[#allocation2] sm:$0xff] }
 0x195   :  { %v185_v57 = vadd.f32 %v184_v55, %v173_v54  ;;  %v175_v58 = vadd.f32 %v174_v56, %v173_v54 }
 0x197   :  { %v186_v59 = vmax.f32 %v185_v57, 1e-12  ;;  %v176_v60 = vmax.f32 %v175_v58, 1e-12 }
 0x199   :  { %298 = vrsqrt.f32 %v186_v59  ;;  %vm189_vm7 = vcmp.eq.f32.partialorder %v186_v59, inf  ;;  %v192_v0 = vand.u32 2147483648, %v186_v59  ;;  %vm191_vm8 = vcmp.eq.f32.partialorder %v186_v59, 0.0 }
 0x19a   :  { %300 = vrsqrt.f32 %v176_v60  ;;  %vm179_vm9 = vcmp.eq.f32.partialorder %v176_v60, inf  ;;  %v182_v3 = vand.u32 2147483648, %v176_v60  ;;  %vm181_vm10 = vcmp.eq.f32.partialorder %v176_v60, 0.0 }
 0x1a3   :  { %v299_v61 = vpop.eup %298 }
 0x1a4   :  { %v301_v62 = vpop.eup %300  ;;  %v188_v63 = vmul.f32 %v299_v61, %v186_v59 }
 0x1a5   :  { %v178_v1 = vmul.f32 %v301_v62, %v176_v60 }
 0x1a6   :  { %v190_v2 = vsel %vm189_vm7, %v186_v59, %v188_v63 }
 0x1a7   :  { %v193_v5 = vsel %vm191_vm8, %v192_v0, %v190_v2  ;;  %v180_v6 = vsel %vm179_vm9, %v176_v60, %v178_v1 }
 0x1a8   :  { %v183_v7 = vsel %vm181_vm10, %v182_v3, %v180_v6 }
 0x1a9   :  { %v195_v9 = vsub.f32 %v183_v7, %v193_v5  ;;  %vm200_vm11 = vcmp.gt.f32.partialorder %v193_v5, %v183_v7 }
 0x1aa   :  { %v214_v10 = vsel %vm200_vm11, 1.0, %v304_v4 }
 0x1ab   :  { %v197_v11 = vadd.f32 %v196_v8, %v195_v9  ;;  %203 = vst.msk [vmem:[%s449_s9] sm:$0xff] %vm36_vm1, %v214_v10 }
 0x1ad   :  { %v198_v12 = vmax.f32 %v197_v11, 0.0 }
 0x1af   :  { %199 = vst.msk [vmem:[%s450_s8] sm:$0xff] %vm36_vm1, %v198_v12 }

</bundles_post_ra>
